<compile_context>
chip_gen: v7x
topology: tpu7x:2x2x1
jax: 0.10.0
libtpu: 0.0.40
codegen_flags: <defaults>
</compile_context>

<pallas_src>
import numpy as np
import jax
import jax.numpy as jnp
from jax.experimental import pallas as pl
from jax.experimental.pallas import tpu as pltpu


_MAX_LANES = 4096                      # lane-dense width cap (multiple of 128)
_TARGET_TILE_ELEMS = 1 << 20           # ~1M elems / tile
_VMEM_LIMIT_BYTES = 32 * 1024 * 1024   # covers double-buffered in+out everywhere
_NATIVE_DTYPES = tuple(np.dtype(d) for d in (jnp.float32, jnp.bfloat16))


# ---------------------------------------------------------------------------
# Pallas kernel: bucketize (sum_b (y > bins[b]) membership count)
# ---------------------------------------------------------------------------
def _make_bucketize_kernel(bins_tuple, out_dtype):
    # Bins baked in as Python floats -> vector immediates, no SMEM traffic.
    def kernel(y_ref, out_ref):
        # In-register upcast so bf16 inputs compare against the f32 boundaries
        # exactly like the f32 reference (values near a boundary don't flip).
        y = y_ref[...].astype(jnp.float32)
        acc = jnp.zeros(y.shape, dtype=jnp.int32)
        # TODO(synk): for n_bins >> 32 switch to a branch-free binary search;
        # the unrolled linear scan is free filler (kernel is HBM-bound).
        for b in bins_tuple:
            acc = acc + (y > b).astype(jnp.int32)
        out_ref[...] = acc.astype(out_dtype)
    return kernel


def _bucketize_jnp(y, bins_tuple, out_dtype):
    """Plain-XLA fallback for tiny ragged tails (identical semantics)."""
    yf = y.astype(jnp.float32)
    acc = jnp.zeros(yf.shape, jnp.int32)
    for b in bins_tuple:
        acc = acc + (yf > b).astype(jnp.int32)
    return acc.astype(out_dtype)


def bucketize_pallas(y, bins, out_dtype=None):
    """result[i] = sum_b (y[i] > bins[b]); same shape as y."""
    y = jnp.asarray(y)
    if np.dtype(y.dtype) not in _NATIVE_DTYPES:
        y = y.astype(jnp.float32)        # ints / f16 / f64 etc.: widen once
    bins_tuple = tuple(float(b) for b in np.asarray(bins).reshape(-1))
    if out_dtype is None:
        # int8 writeback cuts HBM write traffic 4x; valid while counts < 127.
        out_dtype = jnp.int8 if len(bins_tuple) < 127 else jnp.int32

    orig_shape = y.shape
    y_flat = y.reshape(-1)
    total = y_flat.shape[0]
    if total == 0:
        return jnp.zeros(orig_shape, out_dtype)

    # Lane-dense packing WITHOUT padding: widest power-of-two lane width
    # (multiple of 128, <= _MAX_LANES) that exactly divides `total`; if total
    # isn't a multiple of 128, keep lanes=128 and handle the <128-element
    # ragged tail in plain jnp instead of jnp.pad-ing the whole input.
    lanes = 128
    while lanes * 2 <= _MAX_LANES and total % (lanes * 2) == 0:
        lanes *= 2
    main = (total // lanes) * lanes

    if main == 0:
        # Fewer than 128 elements: a kernel launch isn't worth it.
        return _bucketize_jnp(y_flat, bins_tuple, out_dtype).reshape(orig_shape)

    rows = main // lanes
    y2d = y_flat[:main].reshape(rows, lanes)   # contiguous prefix: free reshape

    # Row tiling: ~1M elements per tile so the DMA (not the fixed ~0.35us/step
    # overhead) dominates each grid step.  tile_rows is a multiple of 32
    # sublanes (covers f32/bf16 input and int8 output packing) or the full
    # row extent, which Pallas allows unconditionally.
    tile_rows = max(32, (_TARGET_TILE_ELEMS // lanes) // 32 * 32)
    if tile_rows >= rows:
        tile_rows = rows
    grid = (pl.cdiv(rows, tile_rows),)

    out2d = pl.pallas_call(
        _make_bucketize_kernel(bins_tuple, out_dtype),
        out_shape=jax.ShapeDtypeStruct((rows, lanes), out_dtype),
        grid=grid,
        in_specs=[pl.BlockSpec((tile_rows, lanes), lambda i: (i, 0))],
        out_specs=pl.BlockSpec((tile_rows, lanes), lambda i: (i, 0)),
        compiler_params=pltpu.CompilerParams(
            # TODO(synk): on v7x verify via xprof that "parallel" shards the row
            # axis across both TensorCores; if not, switch to an explicit
            # core_map split of the row range.
            dimension_semantics=("parallel",),
            vmem_limit_bytes=_VMEM_LIMIT_BYTES),
    )(y2d)

    out_flat = out2d.reshape(-1)
    if main != total:
        # Ragged tail (< lanes elements): trivial jnp compute + one int8 concat,
        # far cheaper than re-reading/re-writing the whole f32 input via pad.
        tail = _bucketize_jnp(y_flat[main:], bins_tuple, out_dtype)
        out_flat = jnp.concatenate([out_flat, tail])
    return out_flat.reshape(orig_shape)


# ---------------------------------------------------------------------------
# GroupBy / DispatchByVariable (glue around the kernel)
# ---------------------------------------------------------------------------
class GroupBy:
    """Port of uwnet GroupBy: stores membership array + per-group indices."""

    def __init__(self, memberships):
        self.shape = tuple(memberships.shape)
        # Widen narrow kernel output to int32 on host (free) -- matches the
        # torch bucketize dtype exactly inside the GroupBy object.
        self.memberships = np.asarray(memberships).astype(np.int32).reshape(-1)
        self.compute_group_indices()

    @property
    def n(self):
        return self.memberships.size

    @property
    def groups(self):
        return self.group_indices.keys()

    def compute_group_indices(self):
        # TODO(synk): data-dependent nonzero (variable-length index sets) has
        # no clean Pallas equivalent; computed on host as glue.
        num_indices = 0
        self.group_indices = {}
        k = 0
        while num_indices < self.n:
            inds = np.nonzero(self.memberships == k)[0]
            self.group_indices[k] = inds
            num_indices += inds.shape[0]
            k += 1


class DispatchByVariable:
    """JAX/Pallas port of uwnet.groupby.DispatchByVariable."""

    def __init__(self, bins, objs, variable, index):
        self.bins = tuple(float(b) for b in np.asarray(bins).reshape(-1))
        self.objs = objs
        self.variable = variable
        self.index = index

    def get_binning_variable(self, x):
        # TODO(synk): for very large B*H*W the [..., index] slice could be fused
        # into the kernel via scalar-prefetched index + squeezed last-dim
        # BlockSpec; at tiny Z the strided gather DMA is slower than this one
        # XLA slice, so keep it.
        return x[self.variable][..., self.index]

    def get_bin_membership(self, x):
        y = self.get_binning_variable(x)
        return bucketize_pallas(y, self.bins)

    def __call__(self, x):
        memberships = self.get_bin_membership(x)
        return GroupBy(memberships), memberships


# ---------------------------------------------------------------------------
# Demo / self-test
# ---------------------------------------------------------------------------
if __name__ == "__main__":
    key = jax.random.PRNGKey(0)
    kq, ks, kt = jax.random.split(key, 3)

    # --- main test: module forward, lane-aligned element count ---------------
    B, H, W, Z = 2, 16, 16, 8
    x = {
        "qt": jax.random.uniform(kq, (B, H, W, Z), dtype=jnp.float32),
        "sl": jax.random.uniform(ks, (B, H, W, Z), dtype=jnp.float32),
    }
    bins = [0.25, 0.5, 0.75]
    module = DispatchByVariable(bins=bins, objs=None, variable="qt", index=3)

    groupby, memberships = module(x)
    memberships = jax.block_until_ready(memberships)

    # Reference (plain JAX), matching torch bucketize semantics exactly.
    y = x["qt"][..., 3]
    ref = jnp.zeros(y.shape, jnp.int32)
    for b in bins:
        ref = ref + (y > b).astype(jnp.int32)

    assert memberships.shape == (B, H, W)
    assert bool(jnp.all(memberships.astype(jnp.int32) == ref))
    assert groupby.memberships.dtype == np.int32
    assert sum(v.shape[0] for v in groupby.group_indices.values()) == B * H * W

    # --- secondary test: bf16 input + ragged (non multiple-of-128) tail ------
    y2 = jax.random.uniform(kt, (2, 10, 13), dtype=jnp.float32).astype(jnp.bfloat16)
    out2 = jax.block_until_ready(bucketize_pallas(y2, bins))
    y2f = y2.astype(jnp.float32)
    ref2 = jnp.zeros(y2f.shape, jnp.int32)
    for b in bins:
        ref2 = ref2 + (y2f > b).astype(jnp.int32)
    assert out2.shape == y2.shape
    assert bool(jnp.all(out2.astype(jnp.int32) == ref2))

    print("KERNEL_OK")
</pallas_src>

<mosaic_0001>
module attributes {stable_mosaic.version = 11 : i64} {
  func.func @kernel(%arg0: i32, %arg1: memref<1x512xf32, #tpu.memory_space<vmem>>, %arg2: memref<1x512xi8, #tpu.memory_space<vmem>>) attributes {dimension_semantics = [#tpu.dimension_semantics<parallel>], iteration_bounds = array<i64: 1>, scalar_prefetch = 0 : i64, scratch_operands = 0 : i64, tpu.core_type = #tpu.core_type<tc>, window_params = [{transform_indices = @transform_0, window_bounds = array<i64: 1, 512>}, {transform_indices = @transform_1, window_bounds = array<i64: 1, 512>}]} {
    %c0 = arith.constant 0 : index
    %c0_0 = arith.constant 0 : index
    %0 = vector.load %arg1[%c0, %c0_0] : memref<1x512xf32, #tpu.memory_space<vmem>>, vector<1x512xf32>
    %c0_i32 = arith.constant 0 : i32
    %1 = vector.broadcast %c0_i32 : i32 to vector<1x512xi32>
    %cst = arith.constant 2.500000e-01 : f32
    %2 = vector.broadcast %cst : f32 to vector<1x512xf32>
    %3 = arith.cmpf ogt, %0, %2 : vector<1x512xf32>
    %4 = arith.extui %3 : vector<1x512xi1> to vector<1x512xi32>
    %5 = arith.addi %1, %4 : vector<1x512xi32>
    %cst_1 = arith.constant 5.000000e-01 : f32
    %6 = vector.broadcast %cst_1 : f32 to vector<1x512xf32>
    %7 = arith.cmpf ogt, %0, %6 : vector<1x512xf32>
    %8 = arith.extui %7 : vector<1x512xi1> to vector<1x512xi32>
    %9 = arith.addi %5, %8 : vector<1x512xi32>
    %cst_2 = arith.constant 7.500000e-01 : f32
    %10 = vector.broadcast %cst_2 : f32 to vector<1x512xf32>
    %11 = arith.cmpf ogt, %0, %10 : vector<1x512xf32>
    %12 = arith.extui %11 : vector<1x512xi1> to vector<1x512xi32>
    %13 = arith.addi %9, %12 : vector<1x512xi32>
    %14 = arith.trunci %13 : vector<1x512xi32> to vector<1x512xi8>
    %c0_3 = arith.constant 0 : index
    %c0_4 = arith.constant 0 : index
    %15 = vector.load %arg2[%c0_3, %c0_4] : memref<1x512xi8, #tpu.memory_space<vmem>>, vector<1x512xi8>
    tpu.vector_store %arg2[%c0_3, %c0_4], %14 {strides = array<i32>} : memref<1x512xi8, #tpu.memory_space<vmem>>, vector<1x512xi8>,
    return
  }
  func.func @transform_0(%arg0: i32) -> (i32, i32) {
    %c0_i32 = arith.constant 0 : i32
    %c0_i32_0 = arith.constant 0 : i32
    return %arg0, %c0_i32 : i32, i32
  }
  func.func @transform_1(%arg0: i32) -> (i32, i32) {
    %c0_i32 = arith.constant 0 : i32
    %c0_i32_0 = arith.constant 0 : i32
    return %arg0, %c0_i32 : i32, i32
  }
}

</mosaic_0001>

<bundles_post_ra>
// kernel: tpu_custom_call.1
= control target key start
LH: loop header
LB: loop body
LE: loop exit
PB: predicated region body
PF: predicated region fallthrough
CT: control target
= control target key end

     0   :  { %6 = vsyncpa [#allocation3], 0  ;;  %s218_s0 = inlined_call_operand.hbm [shape: f32[1,512], index: 0, kind: input, shape index: {}]   ;;  %s219_s1 = inlined_call_operand.hbm [shape: s8[1,512], index: 1, kind: output, shape index: {}]  }
   0x1   :  { %7 = vsyncpa [#allocation4], 0  ;;  %s165_s6 = smov [#allocation2]   ;;  %s117_s10 = scalar_lea.hbm %s218_s0, 64 }
   0x2   :  { %s14_s7 = sshll.u32 %s165_s6, 4  ;;  %p118_p0 = scmp.ne.s32.totalorder %s218_s0, %s117_s10  ;;  %s15_s7 = int_to_ptr.vmem [resolvable:$true] %s14_s7 }
   0x3   :  { %p121_p1 = scmp.lt.u32.totalorder %s117_s10, %s218_s0 }
   0x5   :  { %p123_p2 = pnand %p121_p1, %p118_p0 }
   0x7   :  { %126 = shalt.err (!%p123_p2)
}
   0x8   :  { %s127_s15 = scalar_lea.vmem %s15_s7, 64  ;;  %p132_p4 = scmp.lt.s32.totalorder %s15_s7, %s15_s7 }
   0x9   :  { %p128_p3 = scmp.ne.s32.totalorder %s15_s7, %s127_s15  ;;  %p133_p5 = scmp.lt.s32.totalorder %s127_s15, %s127_s15 }
   0xb   :  { %p134_p6 = por %p133_p5, %p132_p4 }
   0xd   :  { %p135_p7 = pnand %p134_p6, %p128_p3 }
   0xf   :  { %138 = shalt.err (!%p135_p7)
}
  0x10   :  { %17 = dma.hbm_to_vmem [thread:$0]  %s218_s0, 64, %s15_s7, [#allocation3]  }
  0x11   :  { %161 = dma.done.wait [#allocation3], 64  }
  0x12   :  { %162 = vsyncadd [#allocation3], 4294967232  ;;  %v30_v0 = vlaneseq  ;;  %v21_v2 = vld [vmem:[#allocation2] sm:$0xf]  ;;  %v166_v3 = vmov 1966171168  }
  0x13   :  { %v57_v4 = vunpack.c.l.s4 %v166_v3  ;;  %vm78_vm0 = vcmask 1040384   ;;  %vm79_vm1 = vsmask.f32 0  ;;  %vm81_vm2 = vcmask 1041409   ;;  %s168_s0 = smov [#allocation5]  }
  0x14   :  { %v31_v1 = vshrl.u32 %v30_v0, 7  ;;  %vm22_vm3 = vcmp.gt.f32.partialorder %v21_v2, 0.25  ;;  %vm24_vm4 = vcmp.gt.f32.partialorder %v21_v2, 0.5  ;;  %vm27_vm5 = vcmp.gt.f32.partialorder %v21_v2, 0.75  ;;  %vm193_vm7 = vmand %vm78_vm0, %vm79_vm1  ;;  %s102_s18 = sshll.u32 %s168_s0, 4  ;;  %s103_s18 = int_to_ptr.vmem [resolvable:$true] %s102_s18 }
  0x15   :  { %vm82_vm6 = vsmask.f32 1024  ;;  %v167_v5 = vmov 0   ;;  %v58_v14 = vunpack.c.0.s8 %v57_v4  ;;  %vm85_vm9 = vcmask 1042434   ;;  %v93_v32 = vld [vmem:[#allocation5] sm:$0xf]  ;;  %p144_p9 = scmp.lt.s32.totalorder %s103_s18, %s103_s18 }
  0x16   :  { %v23_v6 = vsel %vm22_vm3, 1, %v167_v5  ;;  %v25_v7 = vsel %vm24_vm4, 1, %v167_v5  ;;  %v28_v8 = vsel %vm27_vm5, 1, %v167_v5  ;;  %v32_v9 = vsub.s32 0, %v31_v1  ;;  %vm198_vm8 = vmand %vm81_vm2, %vm82_vm6  ;;  %s139_s19 = scalar_lea.vmem %s103_s18, 64 }
  0x17   :  { %v26_v10 = vadd.s32 %v25_v7, %v23_v6  ;;  %v36_v11 = vsub.s32 1, %v31_v1  ;;  %v40_v12 = vsub.s32 2, %v31_v1  ;;  %v44_v13 = vsub.s32 3, %v31_v1  ;;  %vm84_vm11 = vmor %vm198_vm8, %vm193_vm7  ;;  %p140_p8 = scmp.ne.s32.totalorder %s103_s18, %s139_s19  ;;  %p145_p10 = scmp.lt.s32.totalorder %s139_s19, %s139_s19 }
  0x18   :  { %vm86_vm10 = vsmask.f32 2048  ;;  %v61_v22 = vsub.s32 %v58_v14, %v31_v1  ;;  %vm89_vm13 = vcmask 1043459   ;;  %vm90_vm14 = vsmask.f32 3072 }
  0x19   :  { %v29_v16 = vadd.s32 %v28_v8, %v26_v10  ;;  %vm87_vm12 = vmand %vm85_vm9, %vm86_vm10  ;;  %p146_p11 = por %p145_p10, %p144_p9 }
  0x1a   :  { %vm88_vm15 = vmor %vm87_vm12, %vm84_vm11 }
  0x1b   :  { %v33_v18 = vrot.slane %v29_v16, %v32_v9  ;;  %v37_v19 = vrot.slane %v29_v16, %v36_v11  ;;  %v41_v20 = vrot.slane %v29_v16, %v40_v12  ;;  %v45_v21 = vrot.slane %v29_v16, %v44_v13  ;;  %vm91_vm0 = vmand %vm89_vm13, %vm90_vm14  ;;  %p147_p12 = pnand %p146_p11, %p140_p8 }
  0x1c   :  { %vm92_vm1 = vmor %vm91_vm0, %vm88_vm15 }
  0x1d   :  { %v46_v23 = vpack.c.b16 %v33_v18, %v33_v18  ;;  %v48_v24 = vpack.c.b16 %v37_v19, %v37_v19  ;;  %v50_v25 = vpack.c.b16 %v41_v20, %v41_v20  ;;  %v52_v26 = vpack.c.b16 %v45_v21, %v45_v21 }
  0x1f   :  { %v111_v27 = vpack.c.b8 %v48_v24, %v46_v23  ;;  %v112_v28 = vpack.c.b8 %v52_v26, %v50_v25 }
  0x21   :  { %v62_v29 = vrot.slane %v111_v27, %v61_v22  ;;  %v69_v30 = vrot.slane %v112_v28, %v61_v22 }
  0x23   :  { %v70_v31 = vcombine.low %v62_v29, %v69_v30 }
  0x25   :  { %v77_v33 = vrot.slane %v70_v31, %v61_v22 }
  0x27   :  { %v94_v34 = vsel %vm92_vm1, %v77_v33, %v93_v32 }
  0x28   :  { %95 = vst [vmem:[#allocation5] sm:$0xf] %v94_v34 }
  0x29   :  { %150 = shalt.err (!%p147_p12)
}
  0x2a   :  { %s151_s22 = scalar_lea.hbm %s219_s1, 64 }
  0x2b   :  { %p152_p13 = scmp.ne.s32.totalorder %s219_s1, %s151_s22  ;;  %p155_p0 = scmp.lt.u32.totalorder %s151_s22, %s219_s1 }
  0x2d   :  { %p157_p1 = pnand %p155_p0, %p152_p13 }
  0x2f   :  { %160 = shalt.err (!%p157_p1)
}
  0x30   :  { %105 = dma.vmem_to_hbm [thread:$0]  %s103_s18, 64, %s219_s1, [#allocation4]  }
  0x31   :  { %163 = dma.done.wait [#allocation4], 64  }
  0x32   :  { %164 = vsyncadd [#allocation4], 4294967232 }
  0x33   :  { %109 = vsyncpa [#allocation3], 1 }
  0x34   :  { %110 = vsyncpa [#allocation4], 1 }

</bundles_post_ra>
